<compile_context>
chip_gen: v6e
topology: v6e:2x2x1
jax: 0.10.0
libtpu: 0.0.40
codegen_flags: <defaults>
</compile_context>

<pallas_src>
import functools
import math

import jax
import jax.numpy as jnp
import numpy as np
from jax.experimental import pallas as pl
from jax.experimental.pallas import tpu as pltpu


def _diffnet_kernel(qT_ref, *refs, n_dof, n_hidden, n_output):
    # refs = [w0, b0, w1, b1, ..., wL, bL, qd_out_ref, dq_out_ref]
    n_layers = n_hidden + 1
    w_refs = refs[0:2 * n_layers:2]
    b_refs = refs[1:2 * n_layers:2]
    qd_ref = refs[2 * n_layers]
    dq_ref = refs[2 * n_layers + 1]

    x = qT_ref[...]                                   # (n_dof, TB)
    tb = x.shape[-1]

    der = None                                        # (width, n_dof*TB), col = d*TB + b

    # Hidden DifferentialLayers (ReLU activation).
    # TODO(synk): only ReLU hidden / Linear output activations implemented (module
    #             defaults); SoftPlus/Cos/Tanh variants omitted.
    for i in range(n_hidden):
        w = w_refs[i][...]                            # (n_width, in_dim)
        b = b_refs[i][...]                            # (n_width, 1)
        a = jnp.dot(w, x, preferred_element_type=jnp.float32) + b     # (n_width, TB)
        gp = a > 0.0                                  # ReLU' == ceil(clip(a,0,1)) incl. a==0
        x = jnp.maximum(a, 0.0)
        if i == 0:
            # der_prev == identity:  der[w, d*TB + b] = gp[w, b] * W[w, d]
            der = jnp.concatenate(
                [jnp.where(gp, w[:, d:d + 1], 0.0) for d in range(n_dof)], axis=1)
        else:
            # one (W_out, W_in) @ (W_in, n_dof*TB) matmul, then a masked select per dof slab
            t = jnp.dot(w, der, preferred_element_type=jnp.float32)   # (n_width, n_dof*TB)
            der = jnp.concatenate(
                [jnp.where(gp, t[:, d * tb:(d + 1) * tb], 0.0) for d in range(n_dof)],
                axis=1)

    # Output DifferentialLayer (Linear activation, derivative == 1).
    w = w_refs[-1][...]                               # (n_output, n_width)
    b = b_refs[-1][...]                               # (n_output, 1)
    out = jnp.dot(w, x, preferred_element_type=jnp.float32) + b       # (n_output, TB)
    der = jnp.dot(w, der, preferred_element_type=jnp.float32)         # (n_output, n_dof*TB)

    qd_ref[...] = out.astype(qd_ref.dtype)
    for d in range(n_dof):
        dq_ref[:, d, :] = der[:, d * tb:(d + 1) * tb].astype(dq_ref.dtype)


def differential_network(q, weights, biases, *, n_dof, n_width, n_hidden,
                         n_output, batch_tile=256):
    """q: (B, n_dof) -> (qd: (B, n_output), qd_dq: (B, n_output, n_dof))."""
    del n_width  # inferred from the weight shapes
    B = q.shape[0]
    assert n_hidden >= 1
    assert B % batch_tile == 0
    assert batch_tile == B or batch_tile % 128 == 0, "batch_tile must be lane-dense"

    qT = q.T                                          # (n_dof, B) -- transpose once, outside

    kernel = functools.partial(_diffnet_kernel, n_dof=n_dof, n_hidden=n_hidden,
                               n_output=n_output)

    in_specs = [pl.BlockSpec((n_dof, batch_tile), lambda i: (0, i))]
    flat_params = []
    for w, b in zip(weights, biases):
        flat_params.extend([w, b])
        # Constant blocks across the grid; (pipeline_mode=pl.Buffered(1) would avoid
        # double-buffering them, but at these sizes the VMEM saving is negligible.)
        in_specs.append(pl.BlockSpec(w.shape, lambda i: (0, 0)))
        in_specs.append(pl.BlockSpec(b.shape, lambda i: (0, 0)))

    out_shape = (
        jax.ShapeDtypeStruct((n_output, B), jnp.float32),
        jax.ShapeDtypeStruct((n_output, n_dof, B), jnp.float32),
    )
    out_specs = (
        pl.BlockSpec((n_output, batch_tile), lambda i: (0, i)),
        pl.BlockSpec((n_output, n_dof, batch_tile), lambda i: (0, 0, i)),
    )

    qd_T, dq_T = pl.pallas_call(
        kernel,
        grid=(B // batch_tile,),
        in_specs=in_specs,
        out_specs=out_specs,
        out_shape=out_shape,
        compiler_params=pltpu.CompilerParams(
            dimension_semantics=("parallel",)),
    )(qT, *flat_params)

    # Back to the module's batch-major layout (cheap XLA transposes outside the kernel).
    qd = qd_T.T                                        # (B, n_output)
    qd_dq = jnp.transpose(dq_T, (2, 0, 1))             # (B, n_output, n_dof)
    return qd, qd_dq


# ------------------------- parameter init (xavier_normal) -------------------------
def _xavier_normal(key, shape, gain):
    fan_out, fan_in = shape
    std = gain * math.sqrt(2.0 / (fan_in + fan_out))
    return std * jax.random.normal(key, shape, dtype=jnp.float32)


def init_params(key, n_dof, n_width, n_hidden, n_output, b0=0.1,
                g_hidden=math.sqrt(2.0), g_output=1.0, mean_hidden=0.0):
    weights, biases = [], []
    in_dim = n_dof
    for _ in range(n_hidden):
        key, sub = jax.random.split(key)
        w = _xavier_normal(sub, (n_width, in_dim), g_hidden) + mean_hidden
        weights.append(w)
        biases.append(jnp.full((n_width, 1), b0, jnp.float32))
        in_dim = n_width
    key, sub = jax.random.split(key)
    weights.append(_xavier_normal(sub, (n_output, in_dim), g_output))
    biases.append(jnp.full((n_output, 1), b0, jnp.float32))
    return weights, biases


# ------------------------------ pure-JAX reference ------------------------------
def reference_forward(q, weights, biases, n_dof):
    B = q.shape[0]
    der = jnp.broadcast_to(jnp.eye(n_dof, dtype=jnp.float32)[None], (B, n_dof, n_dof))
    x = q
    for li in range(len(weights) - 1):
        w, b = weights[li], biases[li]
        a = x @ w.T + b.reshape(1, -1)
        x = jnp.maximum(a, 0.0)
        gp = jnp.ceil(jnp.clip(a, 0.0, 1.0))          # module's ReLUDer
        der = jnp.matmul(gp[:, :, None] * w[None], der)
    w, b = weights[-1], biases[-1]
    a = x @ w.T + b.reshape(1, -1)
    der = jnp.matmul(jnp.broadcast_to(w[None], (B,) + w.shape), der)
    return a, der


if __name__ == "__main__":
    n_dof, n_width, n_hidden, n_output = 4, 32, 1, 1
    B, batch_tile = 512, 256                          # grid = 2 -> both v7x TCs busy

    key = jax.random.PRNGKey(0)
    key, qkey = jax.random.split(key)
    q = jax.random.normal(qkey, (B, n_dof), dtype=jnp.float32)

    weights, biases = init_params(key, n_dof, n_width, n_hidden, n_output)

    fwd = jax.jit(functools.partial(differential_network, n_dof=n_dof, n_width=n_width,
                                    n_hidden=n_hidden, n_output=n_output,
                                    batch_tile=batch_tile))
    qd, qd_dq = fwd(q, weights, biases)
    qd = jax.block_until_ready(qd)
    qd_dq = jax.block_until_ready(qd_dq)

    ref_qd, ref_dq = reference_forward(q, weights, biases, n_dof)
    np.testing.assert_allclose(np.asarray(qd), np.asarray(ref_qd), rtol=1e-5, atol=1e-5)
    np.testing.assert_allclose(np.asarray(qd_dq), np.asarray(ref_dq), rtol=1e-5, atol=1e-5)

    print("KERNEL_OK")
</pallas_src>

<mosaic_0001>
module attributes {stable_mosaic.version = 11 : i64} {
  func.func @_diffnet_kernel(%arg0: i32, %arg1: memref<4x256xf32, #tpu.memory_space<vmem>>, %arg2: memref<32x4xf32, #tpu.memory_space<vmem>>, %arg3: memref<32x1xf32, #tpu.memory_space<vmem>>, %arg4: memref<1x32xf32, #tpu.memory_space<vmem>>, %arg5: memref<1x1xf32, #tpu.memory_space<vmem>>, %arg6: memref<1x256xf32, #tpu.memory_space<vmem>>, %arg7: memref<1x4x256xf32, #tpu.memory_space<vmem>>) attributes {dimension_semantics = [#tpu.dimension_semantics<parallel>], iteration_bounds = array<i64: 2>, scalar_prefetch = 0 : i64, scratch_operands = 0 : i64, tpu.core_type = #tpu.core_type<tc>, window_params = [{transform_indices = @transform_0, window_bounds = array<i64: 4, 256>}, {pipeline_mode = #tpu.pipeline_mode<synchronous>, transform_indices = @transform_1, window_bounds = array<i64: 32, 4>}, {pipeline_mode = #tpu.pipeline_mode<synchronous>, transform_indices = @transform_2, window_bounds = array<i64: 32, 1>}, {pipeline_mode = #tpu.pipeline_mode<synchronous>, transform_indices = @transform_3, window_bounds = array<i64: 1, 32>}, {pipeline_mode = #tpu.pipeline_mode<synchronous>, transform_indices = @transform_4, window_bounds = array<i64: 1, 1>}, {transform_indices = @transform_5, window_bounds = array<i64: 1, 256>}, {transform_indices = @transform_6, window_bounds = array<i64: 1, 4, 256>}]} {
    %c0 = arith.constant 0 : index
    %c0_0 = arith.constant 0 : index
    %0 = vector.load %arg1[%c0, %c0_0] : memref<4x256xf32, #tpu.memory_space<vmem>>, vector<4x256xf32>
    %c0_1 = arith.constant 0 : index
    %c0_2 = arith.constant 0 : index
    %1 = vector.load %arg2[%c0_1, %c0_2] : memref<32x4xf32, #tpu.memory_space<vmem>>, vector<32x4xf32>
    %c0_3 = arith.constant 0 : index
    %c0_4 = arith.constant 0 : index
    %2 = vector.load %arg3[%c0_3, %c0_4] : memref<32x1xf32, #tpu.memory_space<vmem>>, vector<32x1xf32>
    %cst = arith.constant dense<0.000000e+00> : vector<32x256xf32>
    %3 = tpu.matmul %1, %0, %cst {dimension_numbers = #tpu.dot_dimension_numbers<[1], [0], [0], [1], [0, 0, 1, 1], [], []>} : vector<32x4xf32>, vector<4x256xf32>, vector<32x256xf32> -> vector<32x256xf32>
    %4 = vector.broadcast %2 : vector<32x1xf32> to vector<32x256xf32>
    %5 = arith.addf %3, %4 : vector<32x256xf32>
    %cst_5 = arith.constant 0.000000e+00 : f32
    %6 = vector.broadcast %cst_5 : f32 to vector<32x256xf32>
    %7 = arith.cmpf ogt, %5, %6 : vector<32x256xf32>
    %cst_6 = arith.constant 0.000000e+00 : f32
    %8 = vector.broadcast %cst_6 : f32 to vector<32x256xf32>
    %9 = arith.maximumf %5, %8 : vector<32x256xf32>
    %10 = vector.extract_strided_slice %1 {offsets = [0, 0], sizes = [32, 1], strides = [1, 1]} : vector<32x4xf32> to vector<32x1xf32>
    %cst_7 = arith.constant 0.000000e+00 : f32
    %11 = vector.shape_cast %10 : vector<32x1xf32> to vector<32x1xf32>
    %12 = vector.broadcast %11 : vector<32x1xf32> to vector<32x256xf32>
    %13 = vector.broadcast %cst_7 : f32 to vector<32x256xf32>
    %14 = arith.select %7, %12, %13 : vector<32x256xi1>, vector<32x256xf32>
    %15 = vector.extract_strided_slice %1 {offsets = [0, 1], sizes = [32, 1], strides = [1, 1]} : vector<32x4xf32> to vector<32x1xf32>
    %cst_8 = arith.constant 0.000000e+00 : f32
    %16 = vector.shape_cast %15 : vector<32x1xf32> to vector<32x1xf32>
    %17 = vector.broadcast %16 : vector<32x1xf32> to vector<32x256xf32>
    %18 = vector.broadcast %cst_8 : f32 to vector<32x256xf32>
    %19 = arith.select %7, %17, %18 : vector<32x256xi1>, vector<32x256xf32>
    %20 = vector.extract_strided_slice %1 {offsets = [0, 2], sizes = [32, 1], strides = [1, 1]} : vector<32x4xf32> to vector<32x1xf32>
    %cst_9 = arith.constant 0.000000e+00 : f32
    %21 = vector.shape_cast %20 : vector<32x1xf32> to vector<32x1xf32>
    %22 = vector.broadcast %21 : vector<32x1xf32> to vector<32x256xf32>
    %23 = vector.broadcast %cst_9 : f32 to vector<32x256xf32>
    %24 = arith.select %7, %22, %23 : vector<32x256xi1>, vector<32x256xf32>
    %25 = vector.extract_strided_slice %1 {offsets = [0, 3], sizes = [32, 1], strides = [1, 1]} : vector<32x4xf32> to vector<32x1xf32>
    %cst_10 = arith.constant 0.000000e+00 : f32
    %26 = vector.shape_cast %25 : vector<32x1xf32> to vector<32x1xf32>
    %27 = vector.broadcast %26 : vector<32x1xf32> to vector<32x256xf32>
    %28 = vector.broadcast %cst_10 : f32 to vector<32x256xf32>
    %29 = arith.select %7, %27, %28 : vector<32x256xi1>, vector<32x256xf32>
    %30 = tpu.concatenate %14, %19, %24, %29 in 1 : vector<32x256xf32>, vector<32x256xf32>, vector<32x256xf32>, vector<32x256xf32> -> vector<32x1024xf32>
    %c0_11 = arith.constant 0 : index
    %c0_12 = arith.constant 0 : index
    %31 = vector.load %arg4[%c0_11, %c0_12] : memref<1x32xf32, #tpu.memory_space<vmem>>, vector<1x32xf32>
    %c0_13 = arith.constant 0 : index
    %c0_14 = arith.constant 0 : index
    %32 = vector.load %arg5[%c0_13, %c0_14] : memref<1x1xf32, #tpu.memory_space<vmem>>, vector<1x1xf32>
    %cst_15 = arith.constant dense<0.000000e+00> : vector<1x256xf32>
    %33 = tpu.matmul %31, %9, %cst_15 {dimension_numbers = #tpu.dot_dimension_numbers<[1], [0], [0], [1], [0, 0, 1, 1], [], []>} : vector<1x32xf32>, vector<32x256xf32>, vector<1x256xf32> -> vector<1x256xf32>
    %34 = vector.broadcast %32 : vector<1x1xf32> to vector<1x256xf32>
    %35 = arith.addf %33, %34 : vector<1x256xf32>
    %cst_16 = arith.constant dense<0.000000e+00> : vector<1x1024xf32>
    %36 = tpu.matmul %31, %30, %cst_16 {dimension_numbers = #tpu.dot_dimension_numbers<[1], [0], [0], [1], [0, 0, 1, 1], [], []>} : vector<1x32xf32>, vector<32x1024xf32>, vector<1x1024xf32> -> vector<1x1024xf32>
    %c0_17 = arith.constant 0 : index
    %c0_18 = arith.constant 0 : index
    %37 = vector.load %arg6[%c0_17, %c0_18] : memref<1x256xf32, #tpu.memory_space<vmem>>, vector<1x256xf32>
    tpu.vector_store %arg6[%c0_17, %c0_18], %35 {strides = array<i32>} : memref<1x256xf32, #tpu.memory_space<vmem>>, vector<1x256xf32>,
    %38 = vector.extract_strided_slice %36 {offsets = [0, 0], sizes = [1, 256], strides = [1, 1]} : vector<1x1024xf32> to vector<1x256xf32>
    %c0_19 = arith.constant 0 : index
    %c0_20 = arith.constant 0 : index
    %c0_21 = arith.constant 0 : index
    %39 = vector.load %arg7[%c0_19, %c0_20, %c0_21] : memref<1x4x256xf32, #tpu.memory_space<vmem>>, vector<1x1x256xf32>
    %40 = vector.shape_cast %39 : vector<1x1x256xf32> to vector<1x256xf32>
    %41 = vector.shape_cast %38 : vector<1x256xf32> to vector<1x1x256xf32>
    tpu.vector_store %arg7[%c0_19, %c0_20, %c0_21], %41 {strides = array<i32>} : memref<1x4x256xf32, #tpu.memory_space<vmem>>, vector<1x1x256xf32>,
    %42 = vector.extract_strided_slice %36 {offsets = [0, 256], sizes = [1, 256], strides = [1, 1]} : vector<1x1024xf32> to vector<1x256xf32>
    %c0_22 = arith.constant 0 : index
    %c1 = arith.constant 1 : index
    %c0_23 = arith.constant 0 : index
    %43 = vector.load %arg7[%c0_22, %c1, %c0_23] : memref<1x4x256xf32, #tpu.memory_space<vmem>>, vector<1x1x256xf32>
    %44 = vector.shape_cast %43 : vector<1x1x256xf32> to vector<1x256xf32>
    %45 = vector.shape_cast %42 : vector<1x256xf32> to vector<1x1x256xf32>
    tpu.vector_store %arg7[%c0_22, %c1, %c0_23], %45 {strides = array<i32>} : memref<1x4x256xf32, #tpu.memory_space<vmem>>, vector<1x1x256xf32>,
    %46 = vector.extract_strided_slice %36 {offsets = [0, 512], sizes = [1, 256], strides = [1, 1]} : vector<1x1024xf32> to vector<1x256xf32>
    %c0_24 = arith.constant 0 : index
    %c2 = arith.constant 2 : index
    %c0_25 = arith.constant 0 : index
    %47 = vector.load %arg7[%c0_24, %c2, %c0_25] : memref<1x4x256xf32, #tpu.memory_space<vmem>>, vector<1x1x256xf32>
    %48 = vector.shape_cast %47 : vector<1x1x256xf32> to vector<1x256xf32>
    %49 = vector.shape_cast %46 : vector<1x256xf32> to vector<1x1x256xf32>
    tpu.vector_store %arg7[%c0_24, %c2, %c0_25], %49 {strides = array<i32>} : memref<1x4x256xf32, #tpu.memory_space<vmem>>, vector<1x1x256xf32>,
    %50 = vector.extract_strided_slice %36 {offsets = [0, 768], sizes = [1, 256], strides = [1, 1]} : vector<1x1024xf32> to vector<1x256xf32>
    %c0_26 = arith.constant 0 : index
    %c3 = arith.constant 3 : index
    %c0_27 = arith.constant 0 : index
    %51 = vector.load %arg7[%c0_26, %c3, %c0_27] : memref<1x4x256xf32, #tpu.memory_space<vmem>>, vector<1x1x256xf32>
    %52 = vector.shape_cast %51 : vector<1x1x256xf32> to vector<1x256xf32>
    %53 = vector.shape_cast %50 : vector<1x256xf32> to vector<1x1x256xf32>
    tpu.vector_store %arg7[%c0_26, %c3, %c0_27], %53 {strides = array<i32>} : memref<1x4x256xf32, #tpu.memory_space<vmem>>, vector<1x1x256xf32>,
    return
  }
  func.func @transform_0(%arg0: i32) -> (i32, i32) {
    %c0_i32 = arith.constant 0 : i32
    %c0_i32_0 = arith.constant 0 : i32
    return %c0_i32, %arg0 : i32, i32
  }
  func.func @transform_1(%arg0: i32) -> (i32, i32) {
    %c0_i32 = arith.constant 0 : i32
    %c0_i32_0 = arith.constant 0 : i32
    %c0_i32_1 = arith.constant 0 : i32
    return %c0_i32, %c0_i32_0 : i32, i32
  }
  func.func @transform_2(%arg0: i32) -> (i32, i32) {
    %c0_i32 = arith.constant 0 : i32
    %c0_i32_0 = arith.constant 0 : i32
    %c0_i32_1 = arith.constant 0 : i32
    return %c0_i32, %c0_i32_0 : i32, i32
  }
  func.func @transform_3(%arg0: i32) -> (i32, i32) {
    %c0_i32 = arith.constant 0 : i32
    %c0_i32_0 = arith.constant 0 : i32
    %c0_i32_1 = arith.constant 0 : i32
    return %c0_i32, %c0_i32_0 : i32, i32
  }
  func.func @transform_4(%arg0: i32) -> (i32, i32) {
    %c0_i32 = arith.constant 0 : i32
    %c0_i32_0 = arith.constant 0 : i32
    %c0_i32_1 = arith.constant 0 : i32
    return %c0_i32, %c0_i32_0 : i32, i32
  }
  func.func @transform_5(%arg0: i32) -> (i32, i32) {
    %c0_i32 = arith.constant 0 : i32
    %c0_i32_0 = arith.constant 0 : i32
    return %c0_i32, %arg0 : i32, i32
  }
  func.func @transform_6(%arg0: i32) -> (i32, i32, i32) {
    %c0_i32 = arith.constant 0 : i32
    %c0_i32_0 = arith.constant 0 : i32
    %c0_i32_1 = arith.constant 0 : i32
    return %c0_i32, %c0_i32_0, %arg0 : i32, i32, i32
  }
}

</mosaic_0001>

<bundles_post_ra>
// kernel: differential_network.1
= control target key start
LH: loop header
LB: loop body
LE: loop exit
PB: predicated region body
PF: predicated region fallthrough
CT: control target
= control target key end

     0   :  { %s1680_s0 = inlined_call_operand.vmem [shape: f32[4,512], index: 0, kind: input, shape index: {}]   ;;  %s1681_s1 = inlined_call_operand.vmem [shape: f32[32,4], index: 1, kind: input, shape index: {}]   ;;  %s1682_s2 = inlined_call_operand.vmem [shape: f32[32,1], index: 2, kind: input, shape index: {}]   ;;  %s1683_s3 = inlined_call_operand.vmem [shape: f32[1,32], index: 3, kind: input, shape index: {}]   ;;  %s1684_s4 = inlined_call_operand.<no memory space> [shape: f32[1,1], index: 4, kind: input, shape index: {}]   ;;  %s1685_s5 = inlined_call_operand.hbm [shape: f32[1,512], index: 5, kind: output, shape index: {0}]   ;;  %s1686_s6 = inlined_call_operand.hbm [shape: f32[1,4,512], index: 6, kind: output, shape index: {1}]  }
   0x1   :  { %v12_v0 = vstv %s1684_s4 }
   0x2   :  { %13 = vst [vmem:[#allocation2] sm:$0x1] %v12_v0 }
   0x3   :  { %14 = vsyncpa [#allocation4], 0 }
   0x4   :  { %16 = vsyncpa [#allocation4 + $0x1], 0 }
   0x5   :  { %17 = vsyncpa [#allocation6], 0 }
   0x6   :  { %19 = vsyncpa [#allocation6 + $0x1], 0  ;;  %s1378_s23 = smov 0   ;;  %s1380_s24 = smov 0  }
   0x7   :  { %s1382_s25 = smov 0   ;;  %s1384_s26 = smov 0  }
   0x8 LB: > { %s1399_s4 = sadd.s32 4294967295, %s1330_s26   ;;  %s1114_s27 = sadd.s32 4294967294, %s1330_s26   ;;  %s1330_s26 = sphi %s1384_s26, %s1694_s26   ;;  %s1326_s25 = sphi %s1382_s25, %s1693_s25   ;;  %s1322_s24 = sphi %s1380_s24, %s1692_s24   ;;  %s1318_s23 = sphi %s1378_s23, %s1691_s23  }
   0x9   : > { %s1403_s28 = sadd.s32 1, %s1330_s26   ;;  %s142_s29 = sadd.s32 1, %s1326_s25 }
   0xa   : > { %s139_s30 = ssub.s32 %s1330_s26, %s1403_s28  ;;  %p152_p0 = scmp.ne.s32.totalorder %s1326_s25, %s1322_s24 }
   0xb   : > { %p140_p1 = scmp.eq.s32.totalorder %s139_s30, 0  ;;  %p153_p2 = scmp.eq.s32.totalorder %s1399_s4, 1 }
   0xc   : > { %p158_p3 = scmp.ne.s32.totalorder %s1322_s24, %s1318_s23  ;;  %p159_p4 = scmp.eq.s32.totalorder %s1114_s27, 1 }
   0xd   : > { %s1414_s7 = scalar_select %p140_p1, %s1326_s25, %s142_s29  }
   0xe   : > { %p1416_p5 = por %p153_p2, %p152_p0  ;;  %p1420_p6 = por %p159_p4, %p158_p3 }
   0xf   : > { %p1117_p7 = scmp.ge.s32.totalorder %s1330_s26, 1  ;;  %p224_p8 = scmp.lt.s32.totalorder %s1330_s26, 3 }
  0x11   : > { %p225_p9 = pnand %p1117_p7, %p224_p8 }
  0x12   : > { %s1120_s10 = sshll.u32 (!%p225_p9), %s1399_s4, 1  ;;  %s1580_s17 = sand.u32 (!%p225_p9), 1, %s1322_s24  }
  0x13   : > { %228 = sbr.rel (%p225_p9) target bundleno = 492 (0x1ec), region = 40  ;;  %p260_p10 = scmp.lt.s32.totalorder (!%p225_p9), %s1120_s10, 3 }
  0x14   : > { %s1118_s18 = sshll.u32 (!%p225_p9), %s1580_s17, 1  ;;  %s1176_s20 = sshll.u32 (!%p225_p9), %s1399_s4, 5 }
  0x15   : > { %s251_s21 = scalar_lea.vmem (!%p225_p9), [#allocation3], %s1118_s18  ;;  %s1598_s30 = scalar_lea.hbm (!%p225_p9), %s1685_s5, %s1176_s20 }
  0x16   : > { %s1338_s13 = smov (!%p225_p9), [#allocation3]  }
  0x17   : > { %s1244_s14 = sshll.u32 (!%p225_p9), %s1338_s13, 4  ;;  %s1245_s14 = int_to_ptr.vmem [resolvable:$false] %s1244_s14 }
  0x18   : > { %v1332_v1 = vmov 0.0   ;;  %v273_v2 = vld [vmem:[%s1682_s2 + $0x8] sm:$0xff]  ;;  %v1333_v3 = vmov 0   ;;  %v275_v4 = vld [vmem:[%s1682_s2 + $0x18] sm:$0xff]  ;;  %s1696_s10 = smov (!%p260_p10, %s1120_s10), 3  ;;  %v272_v5 = vld [vmem:[%s1682_s2] sm:$0xff]  ;;  %v524_v62 = vlaneseq }
  0x19   : > { %380 = vmatprep.mubr.f32.mxu0 %v1332_v1  ;;  %596 = vmatprep.mubr.f32.mxu1 %v1332_v1  ;;  %v274_v6 = vld [vmem:[%s1682_s2 + $0x10] sm:$0xff]  ;;  %s1121_s19 = sshll.u32 %s1696_s10, 2  ;;  %vm311_vm0 = vcmask 1043456   ;;  %v268_v9 = vld [vmem:[%s1681_s1] sm:$0xff]  ;;  %vm298_vm1 = vcmask 31744   ;;  %v271_v10 = vld [vmem:[%s1681_s1 + $0x18] sm:$0xff] }
  0x1a   : > { %1229 = vset.pattern.permute.xlu1 %v1333_v3  ;;  %1228 = vset.pattern.permute.xlu0 %v1333_v3  ;;  %s263_s22 = scalar_lea.vmem %s1680_s0, %s1121_s19  ;;  %v1334_v11 = vmov 1   ;;  %v269_v12 = vld [vmem:[%s1681_s1 + $0x8] sm:$0xff]  ;;  %v270_v13 = vld [vmem:[%s1681_s1 + $0x10] sm:$0xff]  ;;  %v1335_v14 = vmov 3   ;;  %v1336_v15 = vmov 2   ;;  %vm528_vm10 = vcmask 261120  }
  0x1b   : > { %283 = vperm.xlu1 %1229, %v273_v2   ;;  %293 = vperm.xlu0 %1228, %v275_v4   ;;  %v267_v7 = vld [vmem:[%s263_s22] sm:$0xff]  ;;  %v525_v63 = vshrl.u32 %v524_v62, 7  ;;  %s1119_s19 = sshll.u32 %s1580_s17, 3  ;;  %s1009_s22 = sshll.u32 %s251_s21, 4  ;;  %vm1589_vm11 = vcmp.lt.s32.totalorder %v524_v62, 256  ;;  %s1600_s22 = int_to_ptr.vmem [resolvable:$true] %s1009_s22 }
  0x1c   : > { %v297_v8 = vcombine.high %v267_v7, %v267_v7  ;;  %v518_v16 = vld [vmem:[#allocation2] sm:$0x1]  ;;  %s1602_s11 = scalar_lea.vmem [#allocation5], %s1119_s19  ;;  %s990_s10 = scalar_lea.sflag [#allocation4], %s1580_s17 }
  0x1d   : > { %v517_v57 = vld [vmem:[%s1683_s3] sm:$0x1]  ;;  %v526_v0 = vsub.s32 0, %v525_v63  ;;  %s1240_s12 = scalar_lea.vmem %s1600_s22, 32  ;;  %s1246_s15 = scalar_lea.vmem %s1245_s14, 64 }
  0x1e   : > { %1122 = vmatprep.subr.msk.mxu0 %vm311_vm0, %v297_v8  ;;  %p1241_p11 = scmp.ne.s32.totalorder %s1600_s22, %s1240_s12  ;;  %p1247_p0 = scmp.lt.s32.totalorder %s1600_s22, %s1245_s14 }
  0x1f   : > { %278 = vperm.xlu1 %1229, %v272_v5   ;;  %288 = vperm.xlu0 %1228, %v274_v6   ;;  %p1248_p1 = scmp.lt.s32.totalorder %s1246_s15, %s1240_s12 }
  0x20   : > { %1123 = vmatpush1.msk.msra.mxu0 %vm311_vm0, %v267_v7  ;;  %p1242_p12 = pnand %p1241_p11, %p1416_p5 }
  0x21   : > { %1124 = vmatmul.mubr.msk.f32.vlgmr.msra.gmra.mxu0 %vm298_vm1, %v268_v9  ;;  %p1249_p2 = por %p1248_p1, %p1247_p0 }
  0x22   : > { %386 = vmatprep.mubr.f32.mxu0 %v1332_v1  ;;  %p1243_p13 = pneg %p1242_p12 }
  0x23   : > { %1230 = vset.pattern.permute.xlu1 %v1334_v11  ;;  %434 = vperm.xlu0 %1228, %v271_v10  }
  0x24   : > { %458 = vperm.xlu1 %1230, %v271_v10   ;;  %p1250_p3 = pnand %p1249_p2, %p1243_p13 }
  0x25   : > { %1125 = vmatmul.mubr.msk.f32.gmra.mxu0 %vm298_vm1, %v269_v12 }
  0x26   : > { %392 = vmatprep.mubr.f32.mxu0 %v1332_v1 }
  0x27   : > { %430 = vperm.xlu0 %1228, %v270_v13  }
  0x28   : > { %454 = vperm.xlu1 %1230, %v270_v13  }
  0x29   : > { %1126 = vmatmul.mubr.msk.f32.gmra.mxu0 %vm298_vm1, %v270_v13 }
  0x2a   : > { %398 = vmatprep.mubr.f32.mxu0 %v1332_v1 }
  0x2b   : > { %426 = vperm.xlu0 %1228, %v269_v12  }
  0x2c   : > { %450 = vperm.xlu1 %1230, %v269_v12  }
  0x2d   : > { %1127 = vmatmul.mubr.msk.f32.gmra.mxu0 %vm298_vm1, %v271_v10 }
  0x2e   : > { %738 = vmatprep.mubr.f32.mxu0 %v1332_v1 }
  0x2f   : > { %422 = vperm.xlu0 %1228, %v268_v9  }
  0x30   : > { %446 = vperm.xlu1 %1230, %v268_v9  }
  0x33   : > { %1231 = vset.pattern.permute.xlu0 %v1336_v15 }
  0x34   : > { %1232 = vset.pattern.permute.xlu1 %v1335_v14  ;;  %482 = vperm.xlu0 %1231, %v271_v10  }
  0x35   : > { %506 = vperm.xlu1 %1232, %v271_v10  }
  0x38   : > { %1234 = vset.pattern.permute.xlu0 %v1335_v14 }
  0x39   : > { %1233 = vset.pattern.permute.xlu1 %v1336_v15  ;;  %502 = vperm.xlu0 %1234, %v270_v13  }
  0x3a   : > { %478 = vperm.xlu1 %1233, %v270_v13  }
  0x3d   : > { %1236 = vset.pattern.permute.xlu0 %v1336_v15 }
  0x3e   : > { %474 = vperm.xlu1 %1233, %v269_v12   ;;  %470 = vperm.xlu0 %1236, %v268_v9  }
  0x42   : > { %1235 = vset.pattern.permute.xlu1 %v1335_v14  ;;  %1238 = vset.pattern.permute.xlu0 %v1333_v3 }
  0x43   : > { %498 = vperm.xlu1 %1235, %v269_v12  }
  0x47   : > { %494 = vperm.xlu1 %1235, %v268_v9  }
  0x4b   : > { %1237 = vset.pattern.permute.xlu1 %v1333_v3  ;;  %v1337_v3 = vmov 1966171168  }
  0x4c   : > { %521 = vperm.xlu1 %1237, %v518_v16   ;;  %v891_v4 = vunpack.c.l.s4 %v1337_v3 }
  0x4e   : > { %v892_v5 = vunpack.c.0.s8 %v891_v4 }
  0x50   : > { %v1583_v10 = vsub.s32 %v892_v5, %v525_v63 }
  0x96   : > { %v284_v17 = vpop.permute.xlu1 %283  ;;  %v294_v20 = vpop.permute.xlu0 %293 }
  0x9a   : > { %v279_v18 = vpop.permute.xlu1 %278  ;;  %v289_v22 = vpop.permute.xlu0 %288 }
  0x9e   : > { %v1464_v24 = vpop.permute.xlu0 %434 }
  0x9f   : > { %v459_v19 = vpop.permute.xlu1 %458 }
  0xa2   : > { %v1466_v29 = vpop.permute.xlu0 %430 }
  0xa3   : > { %v455_v21 = vpop.permute.xlu1 %454 }
  0xa6   : > { %v1468_v34 = vpop.permute.xlu0 %426 }
  0xa7   : > { %v451_v23 = vpop.permute.xlu1 %450 }
  0xaa   : > { %v423_v42 = vpop.permute.xlu0 %422 }
  0xab   : > { %v447_v27 = vpop.permute.xlu1 %446 }
  0xaf   : > { %v483_v53 = vpop.permute.xlu0 %482 }
  0xb0   : > { %v507_v31 = vpop.permute.xlu1 %506 }
  0xb4   : > { %v503_v59 = vpop.permute.xlu0 %502 }
  0xb5   : > { %v1470_v36 = vpop.permute.xlu1 %478 }
  0xb9   : > { %v475_v49 = vpop.permute.xlu1 %474  ;;  %v471_v61 = vpop.permute.xlu0 %470 }
  0xbe   : > { %v499_v58 = vpop.permute.xlu1 %498 }
  0xc2   : > { %v495_v60 = vpop.permute.xlu1 %494 }
  0xc7   : > { %v522_v2 = vpop.permute.xlu1 %521 }
  0xe1   : > { %v382_v25 = vpop.f32.mrf.mxu0 }
  0xe2   : > { %v383_v50 = vadd.f32 %v382_v25, %v279_v18 }
  0xe3   : > { %v384_v26 = vpop.f32.mrf.mxu0 }
  0xe4   : > { %v1490_v47 = vadd.f32 %v384_v26, %v279_v18  ;;  %vm405_vm9 = vcmp.gt.f32.partialorder %v383_v50, 0.0  ;;  %v413_v56 = vmax.f32 %v383_v50, 0.0 }
  0xe5   : > { %v388_v28 = vpop.f32.mrf.mxu0 }
  0xe6   : > { %v1484_v45 = vadd.f32 %v388_v28, %v284_v17  ;;  %vm406_vm8 = vcmp.gt.f32.partialorder %v1490_v47, 0.0  ;;  %v414_v55 = vmax.f32 %v1490_v47, 0.0 }
  0xe7   : > { %v390_v30 = vpop.f32.mrf.mxu0 }
  0xe8   : > { %v1480_v43 = vadd.f32 %v390_v30, %v284_v17  ;;  %vm407_vm7 = vcmp.gt.f32.partialorder %v1484_v45, 0.0  ;;  %v415_v54 = vmax.f32 %v1484_v45, 0.0 }
  0xe9   : > { %v394_v32 = vpop.f32.mrf.mxu0 }
  0xea   : > { %v1478_v41 = vadd.f32 %v394_v32, %v289_v22  ;;  %vm408_vm6 = vcmp.gt.f32.partialorder %v1480_v43, 0.0  ;;  %v416_v52 = vmax.f32 %v1480_v43, 0.0 }
  0xeb   : > { %v396_v33 = vpop.f32.mrf.mxu0 }
  0xec   : > { %v1474_v39 = vadd.f32 %v396_v33, %v289_v22  ;;  %vm409_vm5 = vcmp.gt.f32.partialorder %v1478_v41, 0.0  ;;  %v417_v51 = vmax.f32 %v1478_v41, 0.0 }
  0xed   : > { %v400_v35 = vpop.f32.mrf.mxu0 }
  0xee   : > { %v1472_v37 = vadd.f32 %v400_v35, %v294_v20  ;;  %vm410_vm4 = vcmp.gt.f32.partialorder %v1474_v39, 0.0  ;;  %v418_v48 = vmax.f32 %v1474_v39, 0.0 }
  0xef   : > { %v402_v38 = vpop.f32.mrf.mxu0 }
  0xf0   : > { %v1476_v40 = vadd.f32 %v402_v38, %v294_v20  ;;  %vm411_vm3 = vcmp.gt.f32.partialorder %v1472_v37, 0.0  ;;  %v419_v46 = vmax.f32 %v1472_v37, 0.0 }
  0xf2   : > { %vm412_vm2 = vcmp.gt.f32.partialorder %v1476_v40, 0.0  ;;  %v420_v44 = vmax.f32 %v1476_v40, 0.0 }
  0xf3   : > { %1138 = vmatprep.subr.msk.mxu0 %vm412_vm2, %v459_v19 }
  0xf4   : > { %556 = vmatprep.subr.mxu1 %v420_v44  ;;  %1139 = vmatpush1.msk.msra.mxu0 %vm411_vm3, %v459_v19 }
  0xf5   : > { %557 = vmatpush1.msra.mxu1 %v419_v46  ;;  %1140 = vmatprep.subr.msk.mxu0 %vm410_vm4, %v455_v21 }
  0xf6   : > { %558 = vmatprep.subr.mxu1 %v418_v48  ;;  %1141 = vmatpush1.msk.msra.mxu0 %vm409_vm5, %v455_v21 }
  0xf7   : > { %559 = vmatpush1.msra.mxu1 %v417_v51  ;;  %1142 = vmatprep.subr.msk.mxu0 %vm408_vm6, %v451_v23 }
  0xf8   : > { %560 = vmatprep.subr.mxu1 %v416_v52  ;;  %1143 = vmatpush1.msk.msra.mxu0 %vm407_vm7, %v451_v23 }
  0xf9   : > { %561 = vmatpush1.msra.mxu1 %v415_v54  ;;  %1144 = vmatprep.subr.msk.mxu0 %vm406_vm8, %v447_v27 }
  0xfa   : > { %562 = vmatprep.subr.mxu1 %v414_v55  ;;  %1145 = vmatpush1.msk.msra.mxu0 %vm405_vm9, %v447_v27 }
  0xfb   : > { %563 = vmatpush1.msra.mxu1 %v413_v56  ;;  %1156 = vmatprep.subr.msk.mxu0 %vm412_vm2, %v507_v31 }
  0xfc   : > { %1128 = vmatmul.mubr.msk.f32.vlgmr.msra.gmra.mxu1 %vm528_vm10, %v517_v57  ;;  %1129 = vmatprep.subr.msk.mxu1 %vm412_vm2, %v1464_v24 }
  0xfd   : > { %1146 = vmatmul.mubr.msk.f32.vlgmr.msra.gmra.mxu0 %vm528_vm10, %v517_v57  ;;  %1130 = vmatpush1.msk.msra.mxu1 %vm411_vm3, %v1464_v24 }
  0xfe   : > { %1157 = vmatpush1.msk.msra.mxu0 %vm411_vm3, %v507_v31  ;;  %1131 = vmatprep.subr.msk.mxu1 %vm410_vm4, %v1466_v29 }
  0xff   : > { %1158 = vmatprep.subr.msk.mxu0 %vm410_vm4, %v503_v59  ;;  %1132 = vmatpush1.msk.msra.mxu1 %vm409_vm5, %v1466_v29 }
 0x100   : > { %1159 = vmatpush1.msk.msra.mxu0 %vm409_vm5, %v503_v59  ;;  %1133 = vmatprep.subr.msk.mxu1 %vm408_vm6, %v1468_v34 }
 0x101   : > { %1160 = vmatprep.subr.msk.mxu0 %vm408_vm6, %v499_v58  ;;  %1134 = vmatpush1.msk.msra.mxu1 %vm407_vm7, %v1468_v34 }
 0x102   : > { %1161 = vmatpush1.msk.msra.mxu0 %vm407_vm7, %v499_v58  ;;  %1135 = vmatprep.subr.msk.mxu1 %vm406_vm8, %v423_v42 }
 0x103   : > { %1162 = vmatprep.subr.msk.mxu0 %vm406_vm8, %v495_v60  ;;  %1136 = vmatpush1.msk.msra.mxu1 %vm405_vm9, %v423_v42 }
 0x104   : > { %1163 = vmatpush1.msk.msra.mxu0 %vm405_vm9, %v495_v60  ;;  %667 = vmatprep.mubr.f32.mxu1 %v1332_v1 }
 0x105   : > { %1137 = vmatmul.mubr.msk.f32.vlgmr.msra.gmra.mxu1 %vm528_vm10, %v517_v57  ;;  %1147 = vmatprep.subr.msk.mxu1 %vm412_vm2, %v483_v53 }
 0x106   : > { %1148 = vmatpush1.msk.msra.mxu1 %vm411_vm3, %v483_v53  ;;  %880 = vmatprep.mubr.f32.mxu0 %v1332_v1 }
 0x107   : > { %1149 = vmatprep.subr.msk.mxu1 %vm410_vm4, %v1470_v36  ;;  %1164 = vmatmul.mubr.msk.f32.vlgmr.msra.gmra.mxu0 %vm528_vm10, %v517_v57 }
 0x108   : > { %1150 = vmatpush1.msk.msra.mxu1 %vm409_vm5, %v1470_v36  ;;  %809 = vmatprep.mubr.f32.mxu1 %v1332_v1  ;;  %v527_v1 = vrot.slane %v522_v2, %v526_v0 }
 0x109   : > { %1151 = vmatprep.subr.msk.mxu1 %vm408_vm6, %v475_v49 }
 0x10a   : > { %1152 = vmatpush1.msk.msra.mxu1 %vm407_vm7, %v475_v49 }
 0x10b   : > { %1153 = vmatprep.subr.msk.mxu1 %vm406_vm8, %v471_v61 }
 0x10c   : > { %1154 = vmatpush1.msk.msra.mxu1 %vm405_vm9, %v471_v61 }
 0x10d   : > { %1155 = vmatmul.mubr.msk.f32.vlgmr.msra.gmra.mxu1 %vm528_vm10, %v517_v57 }
 0x1bc   : > { %v598_v6 = vpop.f32.mrf.mxu1 }
 0x1bd   : > { %v599_v7 = vadd.f32 %v598_v6, %v527_v1  ;;  %v740_v8 = vpop.f32.mrf.mxu0 }
 0x1be   : > { %v600_v9 = vpop.f32.mrf.mxu1 }
 0x1bf   : > { %v601_v11 = vadd.f32 %v600_v9, %v527_v1  ;;  %v742_v12 = vpop.f32.mrf.mxu0 }
 0x1c0   : > { %v931_v13 = vcombine.low %v740_v8, %v742_v12 }
 0x1c1   : > { %v889_v14 = vcombine.low %v599_v7, %v601_v11 }
 0x1c2   : > { %v938_v15 = vrot.slane %v931_v13, %v1583_v10 }
 0x1c3   : > { %v896_v16 = vrot.slane %v889_v14, %v1583_v10 }
 0x1c4   : > { %v945_v18 = vrot.slane %v938_v15, %v1583_v10 }
 0x1c5   : > { %v903_v19 = vrot.slane %v896_v16, %v1583_v10  ;;  %v669_v20 = vpop.f32.mrf.mxu1 }
 0x1c6   : > { %1165 = vst.msk [vmem:[%s1602_s11 + $0x1] ss:$4 sm:$0x3] %vm1589_vm11, %v945_v18 }
 0x1c7   : > { %v671_v21 = vpop.f32.mrf.mxu1  ;;  %v882_v22 = vpop.f32.mrf.mxu0  ;;  %909 = vst.msk [vmem:[%s251_s21] sm:$0x3] %vm1589_vm11, %v903_v19 }
 0x1c8   : > { %v912_v23 = vcombine.low %v669_v20, %v671_v21 }
 0x1c9   : > { %1253 = shalt.err (!%p1250_p3)
}
 0x1ca   : > { %s1254_s16 = scalar_lea.hbm %s1598_s30, 32  ;;  %s1258_s20 = scalar_lea.hbm %s1685_s5, 64 }
 0x1cb   : > { %p1255_p4 = scmp.ne.s32.totalorder %s1598_s30, %s1254_s16  ;;  %p1259_p9 = scmp.lt.s32.totalorder %s1598_s30, %s1685_s5 }
 0x1cc   : > { %p1260_p10 = scmp.lt.s32.totalorder %s1258_s20, %s1254_s16 }
 0x1cd   : > { %p1256_p7 = pnand %p1255_p4, %p1416_p5 }
 0x1ce   : > { %p1261_p11 = por %p1260_p10, %p1259_p9 }
 0x1cf   : > { %p1257_p8 = pneg %p1256_p7 }
 0x1d1   : > { %p1262_p12 = pnand %p1261_p11, %p1257_p8 }
 0x1d3   : > { %1265 = shalt.err (!%p1262_p12)
}
 0x1d4   : > { %1178 = dma.vmem_to_hbm [thread:$0]  (%p1416_p5), %s1600_s22, 32, %s1598_s30, %s990_s10   ;;  %v884_v24 = vpop.f32.mrf.mxu0  ;;  %v919_v25 = vrot.slane %v912_v23, %v1583_v10  ;;  %v811_v29 = vpop.f32.mrf.mxu1 }
 0x1d5   : > { %v971_v26 = vcombine.low %v882_v22, %v884_v24  ;;  %s1177_s22 = sshll.u32 %s1399_s4, 7  ;;  %s1023_s29 = sshll.u32 %s1602_s11, 4  ;;  %s1024_s29 = int_to_ptr.vmem [resolvable:$true] %s1023_s29 }
 0x1d6   : > { %v926_v27 = vrot.slane %v919_v25, %v1583_v10  ;;  %v813_v31 = vpop.f32.mrf.mxu1  ;;  %s1021_s12 = scalar_lea.hbm %s1686_s6, %s1177_s22  ;;  %s995_s13 = scalar_lea.sflag [#allocation6], %s1580_s17 }
 0x1d7   : > { %v978_v28 = vrot.slane %v971_v26, %v1583_v10  ;;  %v951_v32 = vcombine.low %v811_v29, %v813_v31  ;;  %s1266_s14 = scalar_lea.vmem %s1024_s29, 128  ;;  %s1339_s4 = smov [#allocation5]  }
 0x1d8   : > { %928 = vst.msk [vmem:[%s1602_s11] ss:$4 sm:$0x3] %vm1589_vm11, %v926_v27  ;;  %p1267_p13 = scmp.ne.s32.totalorder %s1024_s29, %s1266_s14  ;;  %s1270_s15 = sshll.u32 %s1339_s4, 4  ;;  %s1271_s15 = int_to_ptr.vmem [resolvable:$false] %s1270_s15 }
 0x1d9   : > { %v985_v30 = vrot.slane %v978_v28, %v1583_v10  ;;  %v958_v33 = vrot.slane %v951_v32, %v1583_v10  ;;  %s1272_s16 = scalar_lea.vmem %s1271_s15, 256  ;;  %p1273_p2 = scmp.lt.s32.totalorder %s1024_s29, %s1271_s15 }
 0x1da   : > { %p1268_p0 = pnand %p1267_p13, %p1416_p5  ;;  %p1274_p3 = scmp.lt.s32.totalorder %s1272_s16, %s1266_s14 }
 0x1db   : > { %1167 = vst.msk [vmem:[%s1602_s11 + $0x3] ss:$4 sm:$0x3] %vm1589_vm11, %v985_v30  ;;  %v965_v34 = vrot.slane %v958_v33, %v1583_v10 }
 0x1dc   : > { %p1269_p1 = pneg %p1268_p0  ;;  %p1275_p4 = por %p1274_p3, %p1273_p2 }
 0x1dd   : > { %1166 = vst.msk [vmem:[%s1602_s11 + $0x2] ss:$4 sm:$0x3] %vm1589_vm11, %v965_v34 }
 0x1de   : > { %p1276_p7 = pnand %p1275_p4, %p1269_p1 }
 0x1e0   : > { %1279 = shalt.err (!%p1276_p7)
}
 0x1e1   : > { %s1280_s18 = scalar_lea.hbm %s1021_s12, 128  ;;  %s1284_s19 = scalar_lea.hbm %s1686_s6, 256 }
 0x1e2   : > { %p1281_p8 = scmp.ne.s32.totalorder %s1021_s12, %s1280_s18  ;;  %p1285_p11 = scmp.lt.s32.totalorder %s1021_s12, %s1686_s6 }
 0x1e3   : > { %p1286_p12 = scmp.lt.s32.totalorder %s1284_s19, %s1280_s18 }
 0x1e4   : > { %p1282_p9 = pnand %p1281_p8, %p1416_p5 }
 0x1e5   : > { %p1287_p13 = por %p1286_p12, %p1285_p11 }
 0x1e6   : > { %p1283_p10 = pneg %p1282_p9 }
 0x1e8   : > { %p1288_p0 = pnand %p1287_p13, %p1283_p10 }
 0x1ea   : > { %1291 = shalt.err (!%p1288_p0)
}
 0x1eb   : > { %1179 = dma.vmem_to_hbm [thread:$0]  (%p1416_p5), %s1024_s29, 128, %s1021_s12, %s995_s13  }
 0x1ec PF: > { %p1189_p1 = scmp.ge.s32.totalorder %s1330_s26, 2  ;;  %s1035_s27 = sand.u32 1, %s1318_s23  }
 0x1ed   : > { %s1036_s22 = scalar_lea.sflag [#allocation4], %s1035_s27 }
 0x1ee   : > { %p1183_p2 = pnand %p1189_p1, %p1420_p6 }
 0x1f0   : > { %p1184_p3 = pneg %p1183_p2 }
 0x1f2   : > { %1309 = dma.done.wait (%p1184_p3), %s1036_s22, 32  }
 0x1f3   : > { %1311 = vsyncadd (%p1184_p3), %s1036_s22, 4294967264  ;;  %s1045_s30 = scalar_lea.sflag [#allocation6], %s1035_s27 }
 0x1f4   : > { %1313 = dma.done.wait (%p1184_p3), %s1045_s30, 128  }
 0x1f5   : > { %1315 = vsyncadd (%p1184_p3), %s1045_s30, 4294967168  ;;  %p22_p5 = scmp.ge.s32.totalorder %s1403_s28, 4   ;;  %s1691_s23 = smov %s1322_s24 }
 0x1f6   : > { %s1692_s24 = smov %s1326_s25  ;;  %s1693_s25 = smov %s1414_s7 }
 0x1f7   : > { %s1694_s26 = smov %s1403_s28  ;;  %24 = sbr.rel (!%p22_p5) target bundleno = 8 (0x8), region = 95 }
 0x1fc   :  { %1050 = vsyncpa [#allocation4], 1 }
 0x1fd   :  { %1052 = vsyncpa [#allocation4 + $0x1], 1 }
 0x1fe   :  { %1053 = vsyncpa [#allocation6], 1 }
 0x1ff   :  { %1055 = vsyncpa [#allocation6 + $0x1], 1 }

</bundles_post_ra>
